<compile_context>
chip_gen: v5e
topology: v5e:2x2
jax: 0.10.0
libtpu: 0.0.40
codegen_flags: <defaults>
</compile_context>

<pallas_src>
from functools import partial

import jax
import jax.numpy as jnp
from jax.experimental import pallas as pl
from jax.experimental.pallas import tpu as pltpu


def _attn_kernel(x_ref, policy_ref, qw_ref, kw_ref, vw_ref, pw_ref, pb_ref,
                 o_ref, kh_scr, vh_scr, *, num_heads: int, tq: int):
    """One grid step == (batch element b, query tile t).

    x_ref      : (1, N, C) bf16   all-token activations for this batch element
    policy_ref : (1, 1, N) f32    keep-policy along the key axis
    qw_ref     : (C, C)    bf16   Q projection (1/sqrt(hd) pre-folded)
    kw_ref     : (C, C)    bf16   K projection
    vw_ref     : (C, C)    bf16   V projection
    pw_ref     : (C, C)    bf16   output projection
    pb_ref     : (1, C)    f32    output-projection bias
    o_ref      : (1, tq, C) f32
    kh_scr     : (H, N, hd) bf16  head-split K, cached across query tiles
    vh_scr     : (H, N, hd) bf16  head-split V, cached across query tiles
    """
    H = num_heads
    N = x_ref.shape[1]
    C = x_ref.shape[2]
    hd = C // H
    eps = 1e-6

    t = pl.program_id(1)

    # ---- K / V: compute once per batch element (query-tile 0), cache in VMEM.
    @pl.when(t == 0)
    def _():
        x_all = x_ref[0]                                            # (N, C) bf16
        k = jnp.dot(x_all, kw_ref[...], preferred_element_type=jnp.float32)
        v = jnp.dot(x_all, vw_ref[...], preferred_element_type=jnp.float32)
        kh_scr[...] = k.reshape(N, H, hd).transpose(1, 0, 2).astype(jnp.bfloat16)
        vh_scr[...] = v.reshape(N, H, hd).transpose(1, 0, 2).astype(jnp.bfloat16)

    # ---- Q projection for this query tile only.
    q_start = pl.multiple_of(t * tq, tq)
    xq = x_ref[0, pl.ds(q_start, tq), :]                            # (tq, C) bf16
    q = jnp.dot(xq, qw_ref[...], preferred_element_type=jnp.float32)
    qh = q.reshape(tq, H, hd).transpose(1, 0, 2).astype(jnp.bfloat16)  # (H, tq, hd)

    kh = kh_scr[...]                                                # (H, N, hd) bf16
    vh = vh_scr[...]                                                # (H, N, hd) bf16

    # Batched scores over heads (no explicit k.T): (H, tq, N), f32 accumulation.
    s = jnp.einsum('hqd,hkd->hqk', qh, kh, preferred_element_type=jnp.float32)

    # attn_policy[i, j] = policy[j] + (1 - policy[j]) * (i == j)
    #                   = 1 on the diagonal, policy[j] elsewhere.
    pol = policy_ref[0]                                             # (1, N) f32
    row = jax.lax.broadcasted_iota(jnp.int32, (tq, N), 0) + q_start
    col = jax.lax.broadcasted_iota(jnp.int32, (tq, N), 1)
    attn_policy = jnp.where(row == col, 1.0, pol)                   # (tq, N) f32

    # softmax_with_policy in f32 (max over unmasked scores, like the reference).
    m = jnp.max(s, axis=-1, keepdims=True)                          # (H, tq, 1)
    e = jnp.exp(s - m) * attn_policy[None, :, :]                    # (H, tq, N)
    denom = jnp.sum(e, axis=-1, keepdims=True) + eps
    attn = (e + eps / N) * pl.reciprocal(denom, approx=True)        # (H, tq, N)

    # Attention-weighted values, batched over heads: (H, tq, hd).
    oh = jnp.einsum('hqk,hkd->hqd', attn.astype(jnp.bfloat16), vh,
                    preferred_element_type=jnp.float32)

    # Merge heads back to (tq, C) and do ONE full-C output projection.
    o = oh.transpose(1, 0, 2).reshape(tq, C).astype(jnp.bfloat16)
    y = jnp.dot(o, pw_ref[...], preferred_element_type=jnp.float32)
    y = y + pb_ref[...]                                             # (1, C) -> (tq, C)

    o_ref[0] = y.astype(o_ref.dtype)
    # TODO(synk): attn_drop / proj_drop are identity in eval mode (p=0.0) and
    # the return_attn=True path (returning the attention map) is not emitted.


def _choose_query_tile(n_tokens: int) -> int:
    """Largest multiple-of-8 tile (<=128) that evenly divides N; else full N."""
    for t in (128, 64, 32, 16, 8):
        if n_tokens % t == 0:
            return t
    return n_tokens


def _vmem_limit_bytes(n_tokens: int, channels: int, tq: int, num_heads: int) -> int:
    bf16, f32 = 2, 4
    hd = max(channels // num_heads, 1)
    hd_pad = max(hd, 128)                                           # lane padding
    weights = 4 * channels * channels * bf16                        # q/k/v/proj weights
    blocks = (n_tokens * channels + n_tokens) * bf16 \
        + channels * f32 + tq * channels * f32                      # streamed blocks
    scratch = 2 * num_heads * n_tokens * hd_pad * bf16              # cached K/V heads
    inter = (tq + 2 * n_tokens) * channels * f32 \
        + 3 * num_heads * tq * n_tokens * f32                       # q/k/v + score temps
    est = 2 * (weights + blocks) + scratch + 2 * inter              # double-buffer + headroom
    return int(min(max(est, 32 * 1024 * 1024), 64 * 1024 * 1024))


def attention_forward(x, policy, qkv_w, proj_w, proj_b, *, num_heads):
    """x: (B, N, C) f32, policy: (B, N, 1) f32. Returns (B, N, C) f32."""
    B, N, C = x.shape
    H = num_heads
    hd = C // H
    scale = float(hd) ** -0.5

    # Host-side prep: split qkv, fold the softmax scale into the Q weights and
    # cast all matmul operands to bf16 (halves weight DMA / VMEM footprint).
    q_w = (qkv_w[:, :C] * scale).astype(jnp.bfloat16)
    k_w = qkv_w[:, C:2 * C].astype(jnp.bfloat16)
    v_w = qkv_w[:, 2 * C:].astype(jnp.bfloat16)
    p_w = proj_w.astype(jnp.bfloat16)
    p_b = proj_b.reshape(1, C).astype(jnp.float32)
    x_bf = x.astype(jnp.bfloat16)
    policy_k = policy.reshape(B, 1, N).astype(jnp.float32)          # key-axis layout

    tq = _choose_query_tile(N)
    n_qt = N // tq

    kernel = partial(_attn_kernel, num_heads=num_heads, tq=tq)
    return pl.pallas_call(
        kernel,
        out_shape=jax.ShapeDtypeStruct((B, N, C), jnp.float32),
        grid=(B, n_qt),
        in_specs=[
            pl.BlockSpec((1, N, C), lambda b, t: (b, 0, 0)),        # x (all tokens)
            pl.BlockSpec((1, 1, N), lambda b, t: (b, 0, 0)),        # policy
            pl.BlockSpec((C, C), lambda b, t: (0, 0)),              # q_w (scaled)
            pl.BlockSpec((C, C), lambda b, t: (0, 0)),              # k_w
            pl.BlockSpec((C, C), lambda b, t: (0, 0)),              # v_w
            pl.BlockSpec((C, C), lambda b, t: (0, 0)),              # proj_w
            pl.BlockSpec((1, C), lambda b, t: (0, 0)),              # proj_b
        ],
        out_specs=pl.BlockSpec((1, tq, C), lambda b, t: (b, t, 0)),
        scratch_shapes=[
            pltpu.VMEM((H, N, hd), jnp.bfloat16),                   # cached K heads
            pltpu.VMEM((H, N, hd), jnp.bfloat16),                   # cached V heads
        ],
        compiler_params=pltpu.CompilerParams(
            dimension_semantics=("parallel", "arbitrary"),
            vmem_limit_bytes=_vmem_limit_bytes(N, C, tq, num_heads)),
    )(x_bf, policy_k, q_w, k_w, v_w, p_w, p_b)


def attention_reference(x, policy, qkv_w, proj_w, proj_b, *, num_heads):
    """Pure-JAX (f32) re-implementation of the PyTorch forward, for verification."""
    B, N, C = x.shape
    H = num_heads
    hd = C // H
    scale = float(hd) ** -0.5
    eps = 1e-6

    qkv = x @ qkv_w                                                 # (B, N, 3C)
    qkv = qkv.reshape(B, N, 3, H, hd).transpose(2, 0, 3, 1, 4)
    q, k, v = qkv[0], qkv[1], qkv[2]                                # (B, H, N, hd)
    attn = jnp.einsum('bhnd,bhmd->bhnm', q, k) * scale

    pol = policy.reshape(B, 1, 1, N)
    eye = jnp.eye(N, dtype=pol.dtype).reshape(1, 1, N, N)
    attn_policy = pol + (1.0 - pol) * eye
    m = attn.max(-1, keepdims=True)
    e = jnp.exp(attn - m) * attn_policy
    attn = (e + eps / N) / (e.sum(-1, keepdims=True) + eps)

    o = jnp.einsum('bhnm,bhmd->bhnd', attn, v)
    o = o.transpose(0, 2, 1, 3).reshape(B, N, C)
    return o @ proj_w + proj_b


if __name__ == "__main__":
    B, N, C = 2, 8, 32
    num_heads = 4

    key = jax.random.PRNGKey(0)
    kx, kp, kw1, kw2, kb = jax.random.split(key, 5)

    x = jax.random.normal(kx, (B, N, C), dtype=jnp.float32)
    # keep-token policy in {0.0, 1.0}, shape (B, N, 1) like the PyTorch module
    policy = jax.random.bernoulli(kp, 0.7, (B, N, 1)).astype(jnp.float32)

    # Deterministic parameter init (qkv_bias=False; proj has a bias).
    qkv_w = 0.05 * jax.random.normal(kw1, (C, 3 * C), dtype=jnp.float32)
    proj_w = 0.05 * jax.random.normal(kw2, (C, C), dtype=jnp.float32)
    proj_b = 0.05 * jax.random.normal(kb, (1, C), dtype=jnp.float32)

    out = attention_forward(x, policy, qkv_w, proj_w, proj_b, num_heads=num_heads)
    out = jax.block_until_ready(out)

    ref = attention_reference(x, policy, qkv_w, proj_w, proj_b, num_heads=num_heads)
    assert out.shape == (B, N, C)
    # bf16 matmul operands + approx reciprocal -> relaxed tolerance vs f32 ref.
    assert jnp.allclose(out, ref, rtol=2e-2, atol=2e-2), "mismatch vs reference"

    print("KERNEL_OK")
</pallas_src>

<mosaic_0001>
module attributes {stable_mosaic.version = 11 : i64} {
  func.func @_attn_kernel(%arg0: i32, %arg1: i32, %arg2: memref<1x8x32xbf16, #tpu.memory_space<vmem>>, %arg3: memref<1x1x8xf32, #tpu.memory_space<vmem>>, %arg4: memref<32x32xbf16, #tpu.memory_space<vmem>>, %arg5: memref<32x32xbf16, #tpu.memory_space<vmem>>, %arg6: memref<32x32xbf16, #tpu.memory_space<vmem>>, %arg7: memref<32x32xbf16, #tpu.memory_space<vmem>>, %arg8: memref<1x32xf32, #tpu.memory_space<vmem>>, %arg9: memref<1x8x32xf32, #tpu.memory_space<vmem>>, %arg10: memref<4x8x8xbf16, #tpu.memory_space<vmem>>, %arg11: memref<4x8x8xbf16, #tpu.memory_space<vmem>>) attributes {dimension_semantics = [#tpu.dimension_semantics<parallel>, #tpu.dimension_semantics<arbitrary>], iteration_bounds = array<i64: 2, 1>, scalar_prefetch = 0 : i64, scratch_operands = 2 : i64, tpu.core_type = #tpu.core_type<tc>, window_params = [{transform_indices = @transform_0, window_bounds = array<i64: 1, 8, 32>}, {transform_indices = @transform_1, window_bounds = array<i64: 1, 1, 8>}, {pipeline_mode = #tpu.pipeline_mode<synchronous>, transform_indices = @transform_2, window_bounds = array<i64: 32, 32>}, {pipeline_mode = #tpu.pipeline_mode<synchronous>, transform_indices = @transform_3, window_bounds = array<i64: 32, 32>}, {pipeline_mode = #tpu.pipeline_mode<synchronous>, transform_indices = @transform_4, window_bounds = array<i64: 32, 32>}, {pipeline_mode = #tpu.pipeline_mode<synchronous>, transform_indices = @transform_5, window_bounds = array<i64: 32, 32>}, {pipeline_mode = #tpu.pipeline_mode<synchronous>, transform_indices = @transform_6, window_bounds = array<i64: 1, 32>}, {transform_indices = @transform_7, window_bounds = array<i64: 1, 8, 32>}]} {
    %c0_i32 = arith.constant 0 : i32
    %0 = arith.cmpi eq, %arg1, %c0_i32 : i32
    %1 = arith.extui %0 : i1 to i32
    %c0_i32_0 = arith.constant 0 : i32
    %2 = arith.cmpi ne, %1, %c0_i32_0 : i32
    scf.if %2 {
      %c0_28 = arith.constant 0 : index
      %c0_29 = arith.constant 0 : index
      %c0_30 = arith.constant 0 : index
      %57 = vector.load %arg2[%c0_28, %c0_29, %c0_30] : memref<1x8x32xbf16, #tpu.memory_space<vmem>>, vector<1x8x32xbf16>
      %58 = vector.shape_cast %57 : vector<1x8x32xbf16> to vector<8x32xbf16>
      %c0_31 = arith.constant 0 : index
      %c0_32 = arith.constant 0 : index
      %59 = vector.load %arg5[%c0_31, %c0_32] : memref<32x32xbf16, #tpu.memory_space<vmem>>, vector<32x32xbf16>
      %cst_33 = arith.constant dense<0.000000e+00> : vector<8x32xf32>
      %60 = tpu.matmul %58, %59, %cst_33 {dimension_numbers = #tpu.dot_dimension_numbers<[1], [0], [0], [1], [0, 0, 1, 1], [], []>} : vector<8x32xbf16>, vector<32x32xbf16>, vector<8x32xf32> -> vector<8x32xf32>
      %c0_34 = arith.constant 0 : index
      %c0_35 = arith.constant 0 : index
      %61 = vector.load %arg6[%c0_34, %c0_35] : memref<32x32xbf16, #tpu.memory_space<vmem>>, vector<32x32xbf16>
      %cst_36 = arith.constant dense<0.000000e+00> : vector<8x32xf32>
      %62 = tpu.matmul %58, %61, %cst_36 {dimension_numbers = #tpu.dot_dimension_numbers<[1], [0], [0], [1], [0, 0, 1, 1], [], []>} : vector<8x32xbf16>, vector<32x32xbf16>, vector<8x32xf32> -> vector<8x32xf32>
      %63 = vector.shape_cast %60 : vector<8x32xf32> to vector<8x4x8xf32>
      %64 = tpu.transpose %63, [1, 0, 2] : vector<8x4x8xf32> -> vector<4x8x8xf32>
      %65 = arith.truncf %64 : vector<4x8x8xf32> to vector<4x8x8xbf16>
      %c0_37 = arith.constant 0 : index
      %c0_38 = arith.constant 0 : index
      %c0_39 = arith.constant 0 : index
      %66 = vector.load %arg10[%c0_37, %c0_38, %c0_39] : memref<4x8x8xbf16, #tpu.memory_space<vmem>>, vector<4x8x8xbf16>
      tpu.vector_store %arg10[%c0_37, %c0_38, %c0_39], %65 {strides = array<i32>} : memref<4x8x8xbf16, #tpu.memory_space<vmem>>, vector<4x8x8xbf16>,
      %67 = vector.shape_cast %62 : vector<8x32xf32> to vector<8x4x8xf32>
      %68 = tpu.transpose %67, [1, 0, 2] : vector<8x4x8xf32> -> vector<4x8x8xf32>
      %69 = arith.truncf %68 : vector<4x8x8xf32> to vector<4x8x8xbf16>
      %c0_40 = arith.constant 0 : index
      %c0_41 = arith.constant 0 : index
      %c0_42 = arith.constant 0 : index
      %70 = vector.load %arg11[%c0_40, %c0_41, %c0_42] : memref<4x8x8xbf16, #tpu.memory_space<vmem>>, vector<4x8x8xbf16>
      tpu.vector_store %arg11[%c0_40, %c0_41, %c0_42], %69 {strides = array<i32>} : memref<4x8x8xbf16, #tpu.memory_space<vmem>>, vector<4x8x8xbf16>,
    } else {
    }
    %c8_i32 = arith.constant 8 : i32
    %3 = arith.muli %arg1, %c8_i32 : i32
    %4 = tpu.assume_multiple %3, 8 : i32
    %c0 = arith.constant 0 : index
    %5 = arith.index_cast %4 : i32 to index
    %c0_1 = arith.constant 0 : index
    %6 = vector.load %arg2[%c0, %5, %c0_1] : memref<1x8x32xbf16, #tpu.memory_space<vmem>>, vector<1x8x32xbf16>
    %7 = vector.shape_cast %6 : vector<1x8x32xbf16> to vector<8x32xbf16>
    %c0_2 = arith.constant 0 : index
    %c0_3 = arith.constant 0 : index
    %8 = vector.load %arg4[%c0_2, %c0_3] : memref<32x32xbf16, #tpu.memory_space<vmem>>, vector<32x32xbf16>
    %cst = arith.constant dense<0.000000e+00> : vector<8x32xf32>
    %9 = tpu.matmul %7, %8, %cst {dimension_numbers = #tpu.dot_dimension_numbers<[1], [0], [0], [1], [0, 0, 1, 1], [], []>} : vector<8x32xbf16>, vector<32x32xbf16>, vector<8x32xf32> -> vector<8x32xf32>
    %10 = vector.shape_cast %9 : vector<8x32xf32> to vector<8x4x8xf32>
    %11 = tpu.transpose %10, [1, 0, 2] : vector<8x4x8xf32> -> vector<4x8x8xf32>
    %12 = arith.truncf %11 : vector<4x8x8xf32> to vector<4x8x8xbf16>
    %c0_4 = arith.constant 0 : index
    %c0_5 = arith.constant 0 : index
    %c0_6 = arith.constant 0 : index
    %13 = vector.load %arg10[%c0_4, %c0_5, %c0_6] : memref<4x8x8xbf16, #tpu.memory_space<vmem>>, vector<4x8x8xbf16>
    %c0_7 = arith.constant 0 : index
    %c0_8 = arith.constant 0 : index
    %c0_9 = arith.constant 0 : index
    %14 = vector.load %arg11[%c0_7, %c0_8, %c0_9] : memref<4x8x8xbf16, #tpu.memory_space<vmem>>, vector<4x8x8xbf16>
    "tpu.trace_start"() <{level = 10 : i32, message = "hqd,hkd->hqk"}> : () -> ()
    %cst_10 = arith.constant dense<0.000000e+00> : vector<4x8x8xf32>
    %15 = tpu.matmul %12, %13, %cst_10 {dimension_numbers = #tpu.dot_dimension_numbers<[2], [2], [1], [1], [0, 0, 0, 1, 1, 1], [0], [0]>} : vector<4x8x8xbf16>, vector<4x8x8xbf16>, vector<4x8x8xf32> -> vector<4x8x8xf32>
    "tpu.trace_stop"() : () -> ()
    %c0_11 = arith.constant 0 : index
    %c0_12 = arith.constant 0 : index
    %c0_13 = arith.constant 0 : index
    %16 = vector.load %arg3[%c0_11, %c0_12, %c0_13] : memref<1x1x8xf32, #tpu.memory_space<vmem>>, vector<1x1x8xf32>
    %17 = vector.shape_cast %16 : vector<1x1x8xf32> to vector<1x8xf32>
    %18 = tpu.iota {dimensions = array<i32: 0>} : vector<8x8xi32>
    %19 = vector.broadcast %4 : i32 to vector<8x8xi32>
    %20 = arith.addi %18, %19 : vector<8x8xi32>
    %21 = tpu.iota {dimensions = array<i32: 1>} : vector<8x8xi32>
    %22 = arith.cmpi eq, %20, %21 : vector<8x8xi32>
    %cst_14 = arith.constant 1.000000e+00 : f32
    %23 = vector.broadcast %cst_14 : f32 to vector<8x8xf32>
    %24 = vector.shape_cast %17 : vector<1x8xf32> to vector<1x8xf32>
    %25 = vector.broadcast %24 : vector<1x8xf32> to vector<8x8xf32>
    %26 = arith.select %22, %23, %25 : vector<8x8xi1>, vector<8x8xf32>
    %cst_15 = arith.constant dense<0xFF800000> : vector<4x8xf32>
    %27 = vector.multi_reduction <maximumf>, %15, %cst_15 [2] : vector<4x8x8xf32> to vector<4x8xf32>
    %28 = vector.shape_cast %27 : vector<4x8xf32> to vector<4x8x1xf32>
    %29 = vector.broadcast %28 : vector<4x8x1xf32> to vector<4x8x8xf32>
    %30 = arith.subf %15, %29 : vector<4x8x8xf32>
    %31 = math.exp %30 : vector<4x8x8xf32>
    %32 = vector.shape_cast %26 : vector<8x8xf32> to vector<1x8x8xf32>
    %33 = vector.broadcast %32 : vector<1x8x8xf32> to vector<4x8x8xf32>
    %34 = arith.mulf %31, %33 : vector<4x8x8xf32>
    %cst_16 = arith.constant dense<0.000000e+00> : vector<4x8xf32>
    %35 = vector.multi_reduction <add>, %34, %cst_16 [2] : vector<4x8x8xf32> to vector<4x8xf32>
    %36 = vector.shape_cast %35 : vector<4x8xf32> to vector<4x8x1xf32>
    %cst_17 = arith.constant 9.99999997E-7 : f32
    %37 = vector.broadcast %cst_17 : f32 to vector<4x8x1xf32>
    %38 = arith.addf %36, %37 : vector<4x8x1xf32>
    %cst_18 = arith.constant 1.250000e-07 : f32
    %39 = vector.broadcast %cst_18 : f32 to vector<4x8x8xf32>
    %40 = arith.addf %34, %39 : vector<4x8x8xf32>
    %41 = tpu.reciprocal %38 {approx = true} : vector<4x8x1xf32> -> vector<4x8x1xf32>
    %42 = vector.broadcast %41 : vector<4x8x1xf32> to vector<4x8x8xf32>
    %43 = arith.mulf %40, %42 : vector<4x8x8xf32>
    %44 = arith.truncf %43 : vector<4x8x8xf32> to vector<4x8x8xbf16>
    "tpu.trace_start"() <{level = 10 : i32, message = "hqk,hkd->hqd"}> : () -> ()
    %cst_19 = arith.constant dense<0.000000e+00> : vector<4x8x8xf32>
    %45 = tpu.matmul %44, %14, %cst_19 {dimension_numbers = #tpu.dot_dimension_numbers<[2], [1], [1], [2], [0, 0, 0, 1, 1, 2], [0], [0]>} : vector<4x8x8xbf16>, vector<4x8x8xbf16>, vector<4x8x8xf32> -> vector<4x8x8xf32>
    "tpu.trace_stop"() : () -> ()
    %46 = tpu.transpose %45, [1, 0, 2] : vector<4x8x8xf32> -> vector<8x4x8xf32>
    %47 = vector.shape_cast %46 : vector<8x4x8xf32> to vector<8x32xf32>
    %48 = arith.truncf %47 : vector<8x32xf32> to vector<8x32xbf16>
    %c0_20 = arith.constant 0 : index
    %c0_21 = arith.constant 0 : index
    %49 = vector.load %arg7[%c0_20, %c0_21] : memref<32x32xbf16, #tpu.memory_space<vmem>>, vector<32x32xbf16>
    %cst_22 = arith.constant dense<0.000000e+00> : vector<8x32xf32>
    %50 = tpu.matmul %48, %49, %cst_22 {dimension_numbers = #tpu.dot_dimension_numbers<[1], [0], [0], [1], [0, 0, 1, 1], [], []>} : vector<8x32xbf16>, vector<32x32xbf16>, vector<8x32xf32> -> vector<8x32xf32>
    %c0_23 = arith.constant 0 : index
    %c0_24 = arith.constant 0 : index
    %51 = vector.load %arg8[%c0_23, %c0_24] : memref<1x32xf32, #tpu.memory_space<vmem>>, vector<1x32xf32>
    %52 = vector.broadcast %51 : vector<1x32xf32> to vector<8x32xf32>
    %53 = arith.addf %50, %52 : vector<8x32xf32>
    %c0_25 = arith.constant 0 : index
    %c0_26 = arith.constant 0 : index
    %c0_27 = arith.constant 0 : index
    %54 = vector.load %arg9[%c0_25, %c0_26, %c0_27] : memref<1x8x32xf32, #tpu.memory_space<vmem>>, vector<1x8x32xf32>
    %55 = vector.shape_cast %54 : vector<1x8x32xf32> to vector<8x32xf32>
    %56 = vector.shape_cast %53 : vector<8x32xf32> to vector<1x8x32xf32>
    tpu.vector_store %arg9[%c0_25, %c0_26, %c0_27], %56 {strides = array<i32>} : memref<1x8x32xf32, #tpu.memory_space<vmem>>, vector<1x8x32xf32>,
    return
  }
  func.func @transform_0(%arg0: i32, %arg1: i32) -> (i32, i32, i32) {
    %c0_i32 = arith.constant 0 : i32
    %c0_i32_0 = arith.constant 0 : i32
    %c0_i32_1 = arith.constant 0 : i32
    return %arg0, %c0_i32, %c0_i32_0 : i32, i32, i32
  }
  func.func @transform_1(%arg0: i32, %arg1: i32) -> (i32, i32, i32) {
    %c0_i32 = arith.constant 0 : i32
    %c0_i32_0 = arith.constant 0 : i32
    %c0_i32_1 = arith.constant 0 : i32
    return %arg0, %c0_i32, %c0_i32_0 : i32, i32, i32
  }
  func.func @transform_2(%arg0: i32, %arg1: i32) -> (i32, i32) {
    %c0_i32 = arith.constant 0 : i32
    %c0_i32_0 = arith.constant 0 : i32
    %c0_i32_1 = arith.constant 0 : i32
    return %c0_i32, %c0_i32_0 : i32, i32
  }
  func.func @transform_3(%arg0: i32, %arg1: i32) -> (i32, i32) {
    %c0_i32 = arith.constant 0 : i32
    %c0_i32_0 = arith.constant 0 : i32
    %c0_i32_1 = arith.constant 0 : i32
    return %c0_i32, %c0_i32_0 : i32, i32
  }
  func.func @transform_4(%arg0: i32, %arg1: i32) -> (i32, i32) {
    %c0_i32 = arith.constant 0 : i32
    %c0_i32_0 = arith.constant 0 : i32
    %c0_i32_1 = arith.constant 0 : i32
    return %c0_i32, %c0_i32_0 : i32, i32
  }
  func.func @transform_5(%arg0: i32, %arg1: i32) -> (i32, i32) {
    %c0_i32 = arith.constant 0 : i32
    %c0_i32_0 = arith.constant 0 : i32
    %c0_i32_1 = arith.constant 0 : i32
    return %c0_i32, %c0_i32_0 : i32, i32
  }
  func.func @transform_6(%arg0: i32, %arg1: i32) -> (i32, i32) {
    %c0_i32 = arith.constant 0 : i32
    %c0_i32_0 = arith.constant 0 : i32
    %c0_i32_1 = arith.constant 0 : i32
    return %c0_i32, %c0_i32_0 : i32, i32
  }
  func.func @transform_7(%arg0: i32, %arg1: i32) -> (i32, i32, i32) {
    %c0_i32 = arith.constant 0 : i32
    %c0_i32_0 = arith.constant 0 : i32
    return %arg0, %arg1, %c0_i32 : i32, i32, i32
  }
}

</mosaic_0001>

<bundles_post_ra>
// kernel: tpu_custom_call.1
= control target key start
LH: loop header
LB: loop body
LE: loop exit
PB: predicated region body
PF: predicated region fallthrough
CT: control target
= control target key end

     0   :  { %s2417_s0 = inlined_call_operand.hbm [shape: bf16[2,8,32], index: 0, kind: input, shape index: {}]   ;;  %s2418_s1 = inlined_call_operand.hbm [shape: f32[2,1,8], index: 1, kind: input, shape index: {}]   ;;  %s2419_s2 = inlined_call_operand.hbm [shape: bf16[32,32], index: 2, kind: input, shape index: {}]   ;;  %s2420_s3 = inlined_call_operand.hbm [shape: bf16[32,32], index: 3, kind: input, shape index: {}]   ;;  %s2421_s4 = inlined_call_operand.hbm [shape: bf16[32,32], index: 4, kind: input, shape index: {}]   ;;  %s2422_s5 = inlined_call_operand.hbm [shape: bf16[32,32], index: 5, kind: input, shape index: {}]   ;;  %s2423_s6 = inlined_call_operand.vmem [shape: f32[1,32], index: 6, kind: input, shape index: {}]   ;;  %s2424_s7 = inlined_call_operand.hbm [shape: f32[2,8,32], index: 7, kind: output, shape index: {}]  }
   0x1   :  { %2428 = sst [smem:[#allocation26_spill]] %s2419_s2 }
   0x2   :  { %2429 = sst [smem:[#allocation27_spill]] %s2420_s3 }
   0x3   :  { %2430 = sst [smem:[#allocation28_spill]] %s2421_s4 }
   0x4   :  { %2431 = sst [smem:[#allocation29_spill]] %s2422_s5 }
   0x5   :  { %12 = vsyncpa [#allocation5], 0 }
   0x6   :  { %14 = vsyncpa [#allocation5 + $0x1], 0 }
   0x7   :  { %15 = vsyncpa [#allocation8], 0 }
   0x8   :  { %17 = vsyncpa [#allocation8 + $0x1], 0 }
   0x9   :  { %18 = vsyncpa [#allocation11], 0 }
   0xa   :  { %19 = vsyncpa [#allocation14], 0 }
   0xb   :  { %20 = vsyncpa [#allocation6], 0 }
   0xc   :  { %22 = vsyncpa [#allocation6 + $0x1], 0  ;;  %s1998_s24 = smov 0   ;;  %s2000_s25 = smov 0  }
   0xd   :  { %s2002_s26 = smov 0   ;;  %s2004_s27 = smov 0  }
   0xe   :  { %s2006_s28 = smov 0   ;;  %s2008_s29 = smov 0  }
   0xf LB: > { %2432 = sst [smem:[#allocation22_spill]] %s1930_s26  ;;  %s2029_s30 = sadd.s32 4294967295, %s1942_s29   ;;  %s1942_s29 = sphi %s2008_s29, %s28_s29   ;;  %s1938_s28 = sphi %s2006_s28, %s2453_s28   ;;  %s1934_s27 = sphi %s2004_s27, %s2452_s27   ;;  %s1930_s26 = sphi %s2002_s26, %s2448_s26   ;;  %s1926_s25 = sphi %s2000_s25, %s2451_s25   ;;  %s1922_s24 = sphi %s1998_s24, %s2450_s24  }
  0x10   : > { %p1457_p0 = scmp.ge.s32.totalorder %s1942_s29, 1  ;;  %p61_p1 = scmp.eq.s32.totalorder %s2029_s30, 0 }
  0x11   : > { %p230_p2 = scmp.lt.s32.totalorder %s1942_s29, 3  ;;  %s2433_s2 = sld [smem:[#allocation26_spill]] }
  0x12   : > { %s1944_s12 = smov [#allocation9]   ;;  %p1462_p6 = scmp.ge.s32.totalorder %s1942_s29, 2 }
  0x13   : > { %p2037_p3 = pnand %p1457_p0, %p230_p2  ;;  %s243_s13 = sshll.u32 %s1944_s12, 4  ;;  %s244_s13 = int_to_ptr.vmem [resolvable:$true] %s243_s13 }
  0x14   : > { %s2436_s3 = sld [smem:[#allocation27_spill]]  ;;  %s1945_s18 = smov 64  }
  0x15   : > { %p1550_p4 = pneg %p2037_p3  ;;  %s1946_s19 = smov 4  }
  0x16   : > { %s1947_s20 = smov [#allocation10]   ;;  %s2437_s4 = sld [smem:[#allocation28_spill]] }
  0x17   : > { %s241_s10 = sshll.u32 %s2433_s2, 4  ;;  %p2045_p5 = pnand %p1550_p4, %p61_p1  ;;  %s242_s10 = int_to_ptr.hbm [resolvable:$true] %s241_s10 }
  0x18   : > { %s257_s21 = sshll.u32 %s1947_s20, 4  ;;  %s2438_s5 = sld [smem:[#allocation29_spill]]  ;;  %s258_s21 = int_to_ptr.vmem [resolvable:$true] %s257_s21 }
  0x19   : > { %1553 = dma.hbm_to_vmem [thread:$0]  (!%p2045_p5), %s242_s10, 256, %s244_s13, [#allocation8], %s1945_s18, %s1945_s18, %s1946_s19  }
  0x1a   : > { %s255_s17 = sshll.u32 %s2436_s3, 4  ;;  %s1948_s13 = smov [#allocation12]   ;;  %s256_s17 = int_to_ptr.hbm [resolvable:$true] %s255_s17 }
  0x1b   : > { %1556 = dma.hbm_to_vmem [thread:$0]  (!%p2045_p5), %s256_s17, 256, %s258_s21, [#allocation11], %s1945_s18, %s1945_s18, %s1946_s19  }
  0x1c   : > { %s269_s8 = sshll.u32 %s2437_s4, 4  ;;  %s271_s15 = sshll.u32 %s1948_s13, 4  ;;  %s270_s8 = int_to_ptr.hbm [resolvable:$true] %s269_s8  ;;  %s272_s15 = int_to_ptr.vmem [resolvable:$true] %s271_s15 }
  0x1d   : > { %1559 = dma.hbm_to_vmem [thread:$0]  (!%p2045_p5), %s270_s8, 256, %s272_s15, [#allocation11], %s1945_s18, %s1945_s18, %s1946_s19  }
  0x1e   : > { %s283_s10 = sshll.u32 %s2438_s5, 4  ;;  %s1949_s16 = smov [#allocation13]   ;;  %s284_s10 = int_to_ptr.hbm [resolvable:$true] %s283_s10 }
  0x1f   : > { %s285_s20 = sshll.u32 %s1949_s16, 4  ;;  %s1456_s17 = sadd.s32 4294967294, %s1942_s29   ;;  %s286_s20 = int_to_ptr.vmem [resolvable:$true] %s285_s20 }
  0x20   : > { %1562 = dma.hbm_to_vmem [thread:$0]  (!%p2045_p5), %s284_s10, 256, %s286_s20, [#allocation14], %s1945_s18, %s1945_s18, %s1946_s19  }
  0x21   : > { %s40_s21 = sadd.s32 1, %s1938_s28  ;;  %s47_s22 = sadd.s32 1, %s1930_s26 }
  0x22   : > { %p42_p7 = scmp.ge.s32.totalorder %s40_s21, 2  ;;  %p54_p8 = scmp.ne.s32.totalorder %s1930_s26, %s1926_s25 }
  0x23   : > { %p55_p9 = scmp.eq.s32.totalorder %s1942_s29, 0  ;;  %p60_p11 = scmp.ne.s32.totalorder %s1926_s25, %s1922_s24 }
  0x24   : > { %s2455_s21 = smov (%p42_p7, %s40_s21), 0  ;;  %p217_p12 = scmp.eq.s32.totalorder %s2029_s30, 1 }
  0x25   : > { %2439 = sst [smem:[#allocation23_spill]] %s2455_s21  ;;  %p2075_p10 = por %p55_p9, %p54_p8 }
  0x26   : > { %s44_s14 = ssub.s32 %s1938_s28, %s2455_s21  ;;  %p2086_p0 = por %p61_p1, %p60_p11 }
  0x27   : > { %p45_p13 = scmp.eq.s32.totalorder %s44_s14, 0  ;;  %p2090_p2 = por %p217_p12, %p54_p8 }
  0x28   : > { %p223_p4 = scmp.eq.s32.totalorder %s1456_s17, 1  ;;  %p1578_p7 = scmp.lt.s32.totalorder %s1942_s29, 2 }
  0x29   : > { %s2095_s8 = scalar_select %p45_p13, %s1930_s26, %s47_s22  }
  0x2a   : > { %p2097_p5 = por %p223_p4, %p60_p11  ;;  %s302_s12 = sand.u32 1, %s1930_s26  }
  0x2b   : > { %2443 = sst [smem:[#allocation24_spill]] %s2095_s8  ;;  %s1464_s10 = sshll.u32 %s1938_s28, 2 }
  0x2c   : > { %s2444_s9 = scalar_select %p2097_p5, 1, 0 }
  0x2d   : > { %s1463_s13 = sshll.u32 %s302_s12, 2  ;;  %s310_s20 = scalar_lea.hbm %s2417_s0, %s1464_s10 }
  0x2e   : > { %2445 = sst [smem:[#allocation25_spill]] %s2444_s9  ;;  %s312_s14 = sshll.u32 %s310_s20, 4  ;;  %s313_s14 = int_to_ptr.hbm [resolvable:$true] %s312_s14 }
  0x2f   : > { %s306_s2 = scalar_lea.vmem [#allocation4], %s1463_s13  ;;  %p1564_p8 = pnand %p1578_p7, %p2075_p10 }
  0x30   : > { %s314_s3 = sshll.u32 %s306_s2, 4  ;;  %s321_s17 = sand.u32 1, %s1942_s29   ;;  %s315_s3 = int_to_ptr.vmem [resolvable:$true] %s314_s3 }
  0x31   : > { %s327_s5 = scalar_lea.hbm %s2418_s1, %s1938_s28  ;;  %s303_s21 = scalar_lea.sflag [#allocation5], %s302_s12 }
  0x32   : > { %1566 = dma.hbm_to_vmem [thread:$0]  (!%p1564_p8), %s313_s14, 64, %s315_s3, %s303_s21  }
  0x33   : > { %s329_s8 = sshll.u32 %s327_s5, 4  ;;  %s324_s26 = scalar_lea.vmem [#allocation7], %s302_s12  ;;  %s330_s8 = int_to_ptr.hbm [resolvable:$true] %s329_s8 }
  0x34   : > { %s331_s9 = sshll.u32 %s324_s26, 4  ;;  %s322_s10 = scalar_lea.sflag [#allocation8], %s321_s17  ;;  %s332_s9 = int_to_ptr.vmem [resolvable:$true] %s331_s9 }
  0x35   : > { %1569 = dma.hbm_to_vmem [thread:$0]  (!%p1564_p8), %s330_s8, 16, %s332_s9, %s322_s10  }
  0x36   : > { %340 = sbr.rel (%p2037_p3) target bundleno = 1180 (0x49c), region = 48  ;;  %s2117_s2 = sand.u32 (!%p2037_p3), 1, %s1926_s25  }
  0x37   : > { %s1466_s4 = sshll.u32 (!%p2037_p3), %s2117_s2, 2  ;;  %s343_s23 = scalar_lea.sflag (!%p2037_p3), [#allocation5], %s2117_s2 }
  0x38   : > { %s346_s13 = scalar_lea.vmem (!%p2037_p3), [#allocation4], %s1466_s4 }
  0x3b   : > { %1897 = dma.done.wait (%p2086_p0), %s343_s23, 64  }
  0x3c   : > { %1899 = vsyncadd (%p2086_p0), %s343_s23, 4294967232  ;;  %s352_s3 = sand.u32 1, %s2029_s30   ;;  %s355_s26 = scalar_lea.vmem [#allocation7], %s2117_s2 }
  0x3d   : > { %s353_s5 = scalar_lea.sflag [#allocation8], %s352_s3 }
  0x3e   : > { %1901 = dma.done.wait (%p2086_p0), %s353_s5, 16  }
  0x3f   : > { %1903 = vsyncadd (%p2086_p0), %s353_s5, 4294967280 }
  0x40   : > { %1905 = dma.done.wait (%p61_p1), [#allocation8], 256  }
  0x41   : > { %1907 = vsyncadd (%p61_p1), [#allocation8], 4294967040 }
  0x42   : > { %1909 = dma.done.wait (%p61_p1), [#allocation11], 512  }
  0x43   : > { %1911 = vsyncadd (%p61_p1), [#allocation11], 4294966784 }
  0x44   : > { %1913 = dma.done.wait (%p61_p1), [#allocation14], 256  }
  0x45   : > { %1915 = vsyncadd (%p61_p1), [#allocation14], 4294967040  ;;  %v1521_v0 = vld [vmem:[#allocation10 + $0x8] sm:$0xff]  ;;  %v1525_v1 = vld [vmem:[#allocation9 + $0x8] sm:$0xff]  ;;  %vm433_vm0 = vcmask 261120   ;;  %s1950_s11 = smov 104  }
  0x46   : > { %v1520_v2 = vld [vmem:[#allocation10] sm:$0xff]  ;;  %443 = vmatpush.bf16.msra.mxu0 %v1521_v0  ;;  %769 = vmatpush.bf16.msra.mxu2 %v1525_v1  ;;  %v1524_v3 = vld [vmem:[#allocation9] sm:$0xff]  ;;  %s1951_s30 = smov 120   ;;  %s1952_s21 = smov 112   ;;  %v1953_v11 = vmov 1983009808  }
  0x47   : > { %v416_v4 = vld [vmem:[%s346_s13] sm:$0xf]  ;;  %v495_v12 = vunpack.c.l.s4 %v1953_v11  ;;  %v1523_v14 = vld [vmem:[#allocation12 + $0x8] sm:$0xff]  ;;  %vm490_vm1 = vcmask 1047556   ;;  %v1522_v22 = vld [vmem:[#allocation12] sm:$0xff]  ;;  %vm604_vm2 = vcmask 60416  }
  0x48   : > { %v742_v5 = vld [vmem:[%s346_s13] sm:$0xf]  ;;  %472 = vmatpush.bf16.msra.mxu1 %v1523_v14  ;;  %v1954_v25 = vmov 1934713408   ;;  %vm909_vm3 = vcmask 64512   ;;  %vm1061_vm5 = vcmask 1043456  }
  0x49   : > { %v2151_v19 = vunpack.c.0.s8 %v495_v12  ;;  %v519_v26 = vunpack.c.l.s4 %v1954_v25  ;;  %s1955_s18 = smov 24   ;;  %s1956_s8 = smov 16   ;;  %vm1258_vm6 = vcmask 130048   ;;  %vm1260_vm7 = vcmask 195584  }
  0x4a   : > { %444 = vmatpush.bf16.msra.mxu0 %v1520_v2  ;;  %770 = vmatpush.bf16.msra.mxu2 %v1524_v3  ;;  %s1957_s9 = smov 8   ;;  %s1517_s12 = sshll.u32 %s1934_s27, 3 }
  0x4b   : > { %v2160_v34 = vunpack.c.0.s8 %v519_v26  ;;  %s1471_s15 = sshll.u32 %s2117_s2, 3  ;;  %s1312_s14 = scalar_lea.hbm %s2424_s7, %s1517_s12 }
  0x4c   : > { %473 = vmatpush.bf16.msra.mxu1 %v1522_v22  ;;  %s410_s10 = scalar_lea.vmem [#allocation15], %s1471_s15  ;;  %s1316_s23 = sshll.u32 %s1312_s14, 4  ;;  %s1317_s23 = int_to_ptr.hbm [resolvable:$true] %s1316_s23 }
  0x4d   : > { %1480 = vmatmul.msk.bf16.vlgmr.msra.gmra.mxu0 %vm433_vm0, %v416_v4  ;;  %1498 = vmatmul.msk.bf16.vlgmr.msra.gmra.mxu2 %vm433_vm0, %v742_v5  ;;  %s1314_s4 = sshll.u32 %s410_s10, 4  ;;  %s1301_s27 = scalar_lea.sflag [#allocation6], %s2117_s2  ;;  %s1315_s4 = int_to_ptr.vmem [resolvable:$true] %s1314_s4 }
  0x4e   : > { %s1858_s13 = sshra.s32 %s1317_s23, 4  ;;  %s1859_s13 = int_to_ptr.hbm [resolvable:$true] %s1858_s13 }
  0x4f   : > { %1489 = vmatmul.msk.bf16.vlgmr.msra.gmra.mxu1 %vm433_vm0, %v416_v4  ;;  %s1860_s3 = scalar_lea.hbm %s1859_s13, 8  ;;  %p1865_p10 = scmp.lt.s32.totalorder %s1859_s13, %s2424_s7 }
  0x50   : > { %p1861_p1 = scmp.ne.s32.totalorder %s1859_s13, %s1860_s3 }
  0x52   : > { %p1862_p3 = pnand %p1861_p1, %p2090_p2 }
  0x54   : > { %p1863_p9 = pneg %p1862_p3 }
  0xca   : > { %v446_v6 = vpop.f32.mrf.mxu0 }
  0xcb   : > { %486 = vrot.lane.b32.xlu1 %v446_v6, %s1950_s11  ;;  %480 = vrot.lane.b32.xlu0 %v446_v6, %s1951_s30  ;;  %v492_v32 = vrot.slane %v446_v6, 4 }
  0xd0   : > { %v772_v7 = vpop.f32.mrf.mxu2 }
  0xd1   : > { %780 = vrot.lane.b32.xlu2 %v772_v7, %s1952_s21  ;;  %v789_v18 = vrot.slane %v772_v7, 4 }
  0xd2   : > { %v448_v8 = vpop.f32.mrf.mxu0 }
  0xd3   : > { %777 = vrot.lane.b32.xlu1 %v772_v7, %s1951_s30  ;;  %483 = vrot.lane.b32.xlu0 %v446_v6, %s1952_s21 }
  0xd8   : > { %v774_v9 = vpop.f32.mrf.mxu2 }
  0xd9   : > { %783 = vrot.lane.b32.xlu2 %v772_v7, %s1950_s11 }
 0x12b   : > { %v781_v10 = vpop.permute.xlu2 %780 }
 0x12c   : > { %v786_v13 = vrot.slane %v781_v10, 4  ;;  %v790_v23 = vsel %vm490_vm1, %v781_v10, %v789_v18 }
 0x12d   : > { %v798_v29 = vperm.slane %v790_v23, %v2151_v19 }
 0x12e   : > { %v788_v20 = vsel %vm490_vm1, %v786_v13, %v772_v7 }
 0x12f   : > { %v794_v28 = vperm.slane %v788_v20, %v2151_v19  ;;  %v825_v45 = vrot.slane %v798_v29, 4 }
 0x131   : > { %v813_v41 = vrot.slane %v794_v28, 4 }
 0x133   : > { %v784_v24 = vpop.permute.xlu2 %783 }
 0x134   : > { %v799_v31 = vrot.slane %v784_v24, 4 }
 0x13d   : > { %v487_v15 = vpop.permute.xlu1 %486  ;;  %v481_v16 = vpop.permute.xlu0 %480 }
 0x13e   : > { %v502_v17 = vrot.slane %v487_v15, 4  ;;  %v504_v21 = vrot.slane %v481_v16, 4 }
 0x140   : > { %v503_v27 = vsel %vm490_vm1, %v502_v17, %v481_v16  ;;  %v505_v30 = vsel %vm490_vm1, %v487_v15, %v504_v21 }
 0x141   : > { %v509_v33 = vperm.slane %v503_v27, %v2151_v19  ;;  %v513_v42 = vperm.slane %v505_v30, %v2151_v19 }
 0x143   : > { %v514_v52 = vrot.slane %v509_v33, 4  ;;  %v526_v55 = vrot.slane %v513_v42, 4 }
 0x145   : > { %v778_v35 = vpop.permute.xlu1 %777  ;;  %v484_v36 = vpop.permute.xlu0 %483 }
 0x146   : > { %v800_v37 = vsel %vm490_vm1, %v799_v31, %v778_v35  ;;  %v801_v38 = vrot.slane %v778_v35, 4  ;;  %v489_v39 = vrot.slane %v484_v36, 4  ;;  %v493_v40 = vsel %vm490_vm1, %v484_v36, %v492_v32 }
 0x147   : > { %v806_v43 = vperm.slane %v800_v37, %v2151_v19  ;;  %v501_v44 = vperm.slane %v493_v40, %v2151_v19 }
 0x148   : > { %v802_v46 = vsel %vm490_vm1, %v784_v24, %v801_v38  ;;  %v491_v47 = vsel %vm490_vm1, %v489_v39, %v446_v6 }
 0x149   : > { %v810_v48 = vperm.slane %v802_v46, %v2151_v19  ;;  %v811_v49 = vrot.slane %v806_v43, 4  ;;  %v814_v50 = vsel %vm490_vm1, %v806_v43, %v813_v41  ;;  %v497_v51 = vperm.slane %v491_v47, %v2151_v19 }
 0x14a   : > { %v822_v53 = vperm.slane %v814_v50, %v2160_v34  ;;  %v528_v54 = vrot.slane %v501_v44, 4  ;;  %v527_v0 = vsel %vm490_vm1, %v526_v55, %v501_v44 }
 0x14b   : > { %v812_v56 = vsel %vm490_vm1, %v811_v49, %v794_v28  ;;  %v823_v57 = vrot.slane %v810_v48, 4  ;;  %v826_v58 = vsel %vm490_vm1, %v810_v48, %v825_v45  ;;  %v515_v60 = vsel %vm490_vm1, %v514_v52, %v497_v51 }
 0x14c   : > { %v834_v59 = vperm.slane %v826_v58, %v2160_v34  ;;  %v516_v61 = vrot.slane %v497_v51, 4  ;;  %v818_v62 = vperm.slane %v812_v56, %v2160_v34  ;;  %v529_v1 = vsel %vm490_vm1, %v513_v42, %v528_v54 }
 0x14d   : > { %v824_v63 = vsel %vm490_vm1, %v823_v57, %v798_v29  ;;  %v837_v2 = vrot.slane %v822_v53, 4  ;;  %v521_v4 = vperm.slane %v515_v60, %v2160_v34  ;;  %v533_v7 = vperm.slane %v527_v0, %v2160_v34 }
 0x14e   : > { %v517_v3 = vsel %vm490_vm1, %v509_v33, %v516_v61  ;;  %v830_v5 = vperm.slane %v824_v63, %v2160_v34  ;;  %v841_v6 = vrot.slane %v834_v59, 4  ;;  %v537_v8 = vperm.slane %v529_v1, %v2160_v34 }
 0x14f   : > { %v835_v9 = vrot.slane %v818_v62, 4  ;;  %v525_v10 = vperm.slane %v517_v3, %v2160_v34  ;;  %v838_v11 = vsel %vm490_vm1, 0.0, %v837_v2  ;;  %v843_v12 = vsel %vm490_vm1, %v837_v2, %v818_v62 }
 0x150   : > { %v538_v13 = vrot.slane %v521_v4, 4  ;;  %v839_v15 = vrot.slane %v830_v5, 4  ;;  %v842_v16 = vsel %vm490_vm1, 0.0, %v841_v6  ;;  %v542_v17 = vrot.slane %v533_v7, 4 }
 0x151   : > { %v540_v14 = vrot.slane %v525_v10, 4  ;;  %v544_v18 = vrot.slane %v537_v8, 4  ;;  %v836_v20 = vsel %vm490_vm1, 0.0, %v835_v9  ;;  %v848_v21 = vrot.slane %v838_v11, 4 }
 0x152   : > { %v859_v28 = vrot.slane %v842_v16, 4  ;;  %v539_v29 = vsel %vm490_vm1, 0.0, %v538_v13  ;;  %v840_v32 = vsel %vm490_vm1, 0.0, %v839_v15  ;;  %v543_v33 = vsel %vm490_vm1, 0.0, %v542_v17 }
 0x153   : > { %v541_v22 = vsel %vm490_vm1, 0.0, %v540_v14  ;;  %v546_v23 = vsel %vm490_vm1, %v540_v14, %v521_v4  ;;  %v545_v24 = vsel %vm490_vm1, 0.0, %v544_v18  ;;  %v557_v27 = vsel %vm490_vm1, %v544_v18, %v533_v7 }
 0x154   : > { %v550_v25 = vperm.slane %v546_v23, %v2151_v19  ;;  %v551_v26 = vrot.slane %v541_v22, 4  ;;  %v561_v30 = vperm.slane %v557_v27, %v2151_v19  ;;  %v562_v31 = vrot.slane %v545_v24, 4 }
 0x155   : > { %v854_v37 = vsel %vm490_vm1, %v841_v6, %v830_v5  ;;  %v849_v41 = vsel %vm490_vm1, %v848_v21, %v836_v20  ;;  %v847_v43 = vperm.slane %v843_v12, %v2151_v19  ;;  %v860_v44 = vsel %vm490_vm1, %v859_v28, %v840_v32 }
 0x156   : > { %v552_v35 = vsel %vm490_vm1, %v551_v26, %v539_v29  ;;  %v570_v36 = vrot.slane %v550_v25, 4  ;;  %v563_v39 = vsel %vm490_vm1, %v562_v31, %v543_v33  ;;  %v582_v40 = vrot.slane %v561_v30, 4 }
 0x157   : > { %v556_v38 = vperm.slane %v552_v35, %v2151_v19  ;;  %v567_v42 = vperm.slane %v563_v39, %v2151_v19  ;;  %v858_v47 = vperm.slane %v854_v37, %v2151_v19  ;;  %v853_v51 = vperm.slane %v849_v41, %v2151_v19 }
 0x158   : > { %v864_v57 = vperm.slane %v860_v44, %v2151_v19  ;;  %v867_v58 = vrot.slane %v847_v43, 4 }
 0x159   : > { %v568_v45 = vrot.slane %v556_v38, 4  ;;  %v571_v46 = vsel %vm490_vm1, %v556_v38, %v570_v36  ;;  %v580_v49 = vrot.slane %v567_v42, 4  ;;  %v583_v50 = vsel %vm490_vm1, %v567_v42, %v582_v40  ;;  %v2248_v40 = vpop.f32.mrf.mxu1 }
 0x15a   : > { %v579_v48 = vperm.slane %v571_v46, %v2160_v34  ;;  %v591_v53 = vperm.slane %v583_v50, %v2160_v34  ;;  %v879_v63 = vrot.slane %v858_v47, 4  ;;  %v865_v3 = vrot.slane %v853_v51, 4 }
 0x15b   : > { %v569_v52 = vsel %vm490_vm1, %v568_v45, %v550_v25  ;;  %v581_v55 = vsel %vm490_vm1, %v580_v49, %v561_v30  ;;  %v877_v6 = vrot.slane %v864_v57, 4  ;;  %v868_v9 = vsel %vm490_vm1, %v853_v51, %v867_v58 }
 0x15c   : > { %v575_v54 = vperm.slane %v569_v52, %v2160_v34  ;;  %v598_v56 = vrot.slane %v579_v48, 4  ;;  %v587_v59 = vperm.slane %v581_v55, %v2160_v34  ;;  %v596_v60 = vrot.slane %v591_v53, 4 }
 0x15d   : > { %v880_v11 = vsel %vm490_vm1, %v864_v57, %v879_v63  ;;  %v866_v12 = vsel %vm490_vm1, %v865_v3, %v847_v43  ;;  %v876_v13 = vperm.slane %v868_v9, %v2160_v34  ;;  %v878_v14 = vsel %vm490_vm1, %v877_v6, %v858_v47 }
 0x15e   : > { %v594_v61 = vrot.slane %v575_v54, 4  ;;  %v599_v62 = vsel %vm490_vm1, %v591_v53, %v598_v56  ;;  %v592_v0 = vrot.slane %v587_v59, 4  ;;  %v597_v1 = vsel %vm490_vm1, %v596_v60, %v579_v48 }
 0x15f   : > { %v603_v2 = vpack.c.bf16 %v599_v62, %v599_v62  ;;  %v602_v5 = vpack.c.bf16 %v597_v1, %v597_v1  ;;  %v888_v15 = vperm.slane %v880_v11, %v2160_v34  ;;  %v872_v16 = vperm.slane %v866_v12, %v2160_v34 }
 0x160   : > { %v595_v4 = vsel %vm490_vm1, %v587_v59, %v594_v61  ;;  %v593_v7 = vsel %vm490_vm1, %v592_v0, %v575_v54  ;;  %v884_v17 = vperm.slane %v878_v14, %v2160_v34  ;;  %v895_v20 = vrot.slane %v876_v13, 4  ;;  %v1646_v61 = vld [vmem:[%s355_s26] ss:$0 sm:$0xff] }
 0x161   : > { %v601_v8 = vpack.c.bf16 %v595_v4, %v595_v4  ;;  %608 = vst.msk [vmem:[#allocation2 + $0xc] sm:$0xf] %vm604_vm2, %v603_v2  ;;  %v600_v10 = vpack.c.bf16 %v593_v7, %v593_v7  ;;  %v893_v23 = vrot.slane %v888_v15, 4  ;;  %v891_v26 = vrot.slane %v872_v16, 4  ;;  %v477_v41 = vpop.f32.mrf.mxu1 }
 0x162   : > { %607 = vst.msk [vmem:[#allocation2 + $0x8] sm:$0xf] %vm604_vm2, %v602_v5  ;;  %v889_v29 = vrot.slane %v884_v17, 4  ;;  %v896_v31 = vsel %vm490_vm1, %v888_v15, %v895_v20  ;;  %v987_v54 = vlaneseq }
 0x163   : > { %606 = vst.msk [vmem:[#allocation2 + $0x4] sm:$0xf] %vm604_vm2, %v601_v8  ;;  %v894_v32 = vsel %vm490_vm1, %v893_v23, %v876_v13  ;;  %v892_v33 = vsel %vm490_vm1, %v884_v17, %v891_v26  ;;  %v900_v36 = vpack.c.bf16 %v896_v31, %v896_v31 }
 0x164   : > { %605 = vst.msk [vmem:[#allocation2] sm:$0xf] %vm604_vm2, %v600_v10  ;;  %v890_v35 = vsel %vm490_vm1, %v889_v29, %v872_v16  ;;  %v899_v37 = vpack.c.bf16 %v894_v32, %v894_v32  ;;  %v898_v38 = vpack.c.bf16 %v892_v33, %v892_v33  ;;  %v988_v57 = vshrl.u32 %v987_v54, 7 }
 0x165   : > { %v897_v39 = vpack.c.bf16 %v890_v35, %v890_v35  ;;  %v992_v58 = vand.u32 127, %v987_v54 }
 0x167   : > { %vm993_vm4 = vcmp.eq.s32.totalorder %v988_v57, %v992_v58 }
 0x168   : > { %v904_v18 = vld [vmem:[#allocation2 + $0xc] sm:$0xf]  ;;  %v997_v4 = vsel %vm993_vm4, 1.0, %v1646_v61 }
 0x169   : > { %v903_v21 = vld [vmem:[#allocation2 + $0x8] sm:$0xf]  ;;  %v971_v22 = vsel %vm909_vm3, %v904_v18, 0 }
 0x16a   : > { %v952_v24 = vsel %vm909_vm3, %v903_v21, 0  ;;  %980 = vmatpush.bf16.xpose.msrb.mxu2 %v971_v22  ;;  %v902_v25 = vld [vmem:[#allocation2 + $0x4] sm:$0xf] }
 0x16b   : > { %961 = vmatpush.bf16.xpose.msrb.mxu1 %v952_v24  ;;  %v901_v27 = vld [vmem:[#allocation2] sm:$0xf]  ;;  %v933_v28 = vsel %vm909_vm3, %v902_v25, 0  ;;  %v621_v24 = vrot.slane %v2248_v40, 4 }
 0x16c   : > { %v914_v30 = vsel %vm909_vm3, %v901_v27, 0  ;;  %942 = vmatpush.bf16.xpose.msrb.mxu0 %v933_v28 }
 0x16d   : > { %923 = vmatpush.bf16.xpose.msra.mxu3 %v914_v30 }
 0x171   : > { %1502 = vmatmul.msk.bf16.vlgmr.msrb.gmra.mxu2 %vm909_vm3, %v900_v36 }
 0x172   : > { %1501 = vmatmul.msk.bf16.vlgmr.msrb.gmra.mxu1 %vm909_vm3, %v899_v37 }
 0x173   : > { %1500 = vmatmul.msk.bf16.vlgmr.msrb.gmra.mxu0 %vm909_vm3, %v898_v38 }
 0x174   : > { %1499 = vmatmul.msk.bf16.vlgmr.msra.gmra.mxu3 %vm909_vm3, %v897_v39 }
 0x1ef   : > { %v963_v42 = vpop.f32.mrf.mxu1 }
 0x1f0   : > { %v1004_v43 = vsel %vm909_vm3, %v963_v42, -inf  ;;  %v944_v44 = vpop.f32.mrf.mxu0 }
 0x1f1   : > { %1005 = vmax.xlane.f32.xlu2 %v1004_v43  ;;  %v1001_v50 = vsel %vm909_vm3, %v944_v44, -inf }
 0x1f4   : > { %v982_v45 = vpop.f32.mrf.mxu2 }
 0x1f5   : > { %v1007_v46 = vsel %vm909_vm3, %v982_v45, -inf }
 0x1f6   : > { %1008 = vmax.xlane.f32.xlu1 %v1007_v46 }
 0x1f7   : > { %v925_v47 = vpop.f32.mrf.mxu3  ;;  %v965_v48 = vpop.f32.mrf.mxu1 }
 0x1f8   : > { %v998_v49 = vsel %vm909_vm3, %v925_v47, -inf  ;;  %v946_v51 = vpop.f32.mrf.mxu0 }
 0x1f9   : > { %999 = vmax.xlane.f32.xlu0 %v998_v49  ;;  %1002 = vmax.xlane.f32.xlu2 %v1001_v50 }
 0x1fc   : > { %v984_v52 = vpop.f32.mrf.mxu2 }
 0x1ff   : > { %v927_v53 = vpop.f32.mrf.mxu3 }
 0x20d   : > { %610 = vrot.lane.b32.xlu0 %v2248_v40, %s1951_s30 }
 0x20f   : > { %613 = vrot.lane.b32.xlu1 %v2248_v40, %s1952_s21 }
 0x211   : > { %616 = vrot.lane.b32.xlu2 %v2248_v40, %s1950_s11  ;;  %s1864_s11 = scalar_lea.hbm %s2424_s7, 16 }
 0x212   : > { %p1866_p11 = scmp.lt.s32.totalorder %s1864_s11, %s1860_s3 }
 0x214   : > { %p1867_p12 = por %p1866_p11, %p1865_p10 }
 0x216   : > { %p1868_p13 = pnand %p1867_p12, %p1863_p9 }
 0x264   : > { %v1006_v55 = vpop.xlane.xlu2 %1005 }
 0x265   : > { %v1012_v56 = vsub.f32 %v963_v42, %v1006_v55 }
 0x267   : > { %v1018_v59 = vmul.f32 1.442695, %v1012_v56 }
 0x269   : > { %1648 = vpow2.f32 %v1018_v59  ;;  %v1009_v60 = vpop.xlane.xlu1 %1008 }
 0x26a   : > { %v1013_v62 = vsub.f32 %v982_v45, %v1009_v60 }
 0x26c   : > { %v1020_v63 = vmul.f32 1.442695, %v1013_v62  ;;  %v1000_v0 = vpop.xlane.xlu0 %999  ;;  %v1003_v1 = vpop.xlane.xlu2 %1002 }
 0x26d   : > { %v1010_v2 = vsub.f32 %v925_v47, %v1000_v0  ;;  %v1011_v3 = vsub.f32 %v944_v44, %v1003_v1 }
 0x26e   : > { %1650 = vpow2.f32 %v1020_v63 }
 0x26f   : > { %v1649_v5 = vpop.eup %1648  ;;  %v1014_v6 = vmul.f32 1.442695, %v1010_v2  ;;  %v1016_v8 = vmul.f32 1.442695, %v1011_v3 }
 0x270   : > { %v2262_v7 = vmul.f32 %v1649_v5, %v997_v4 }
 0x271   : > { %1652 = vpow2.f32 %v1014_v6 }
 0x272   : > { %v1032_v9 = vsel %vm909_vm3, %v2262_v7, 0.0  ;;  %1654 = vpow2.f32 %v1016_v8 }
 0x273   : > { %1033 = vadd.xlane.f32.xlu2 %v1032_v9 }
 0x274   : > { %v1651_v10 = vpop.eup %1650  ;;  %v617_v17 = vpop.permute.xlu2 %616 }
 0x275   : > { %v2266_v11 = vmul.f32 %v1651_v10, %v997_v4  ;;  %v631_v18 = vrot.slane %v617_v17, 4 }
 0x277   : > { %v1653_v12 = vpop.eup %1652  ;;  %v1035_v13 = vsel %vm909_vm3, %v2266_v11, 0.0 }
 0x278   : > { %1036 = vadd.xlane.f32.xlu1 %v1035_v13  ;;  %v2270_v14 = vmul.f32 %v1653_v12, %v997_v4  ;;  %v1655_v16 = vpop.eup %1654 }
 0x279   : > { %v2274_v20 = vmul.f32 %v1655_v16, %v997_v4 }
 0x27a   : > { %v1026_v15 = vsel %vm909_vm3, %v2270_v14, 0.0 }
 0x27b   : > { %1027 = vadd.xlane.f32.xlu0 %v1026_v15  ;;  %v1029_v28 = vsel %vm909_vm3, %v2274_v20, 0.0 }
 0x27f   : > { %v611_v21 = vpop.permute.xlu0 %610 }
 0x280   : > { %v632_v22 = vsel %vm490_vm1, %v631_v18, %v611_v21  ;;  %v633_v23 = vrot.slane %v611_v21, 4 }
 0x281   : > { %v638_v25 = vperm.slane %v632_v22, %v2151_v19  ;;  %v614_v26 = vpop.permute.xlu1 %613 }
 0x282   : > { %v634_v27 = vsel %vm490_vm1, %v617_v17, %v633_v23  ;;  %v619_v29 = vrot.slane %v614_v26, 4  ;;  %v622_v30 = vsel %vm490_vm1, %v614_v26, %v621_v24 }
 0x283   : > { %v642_v31 = vperm.slane %v634_v27, %v2151_v19  ;;  %1030 = vadd.xlane.f32.xlu0 %v1029_v28  ;;  %v630_v32 = vperm.slane %v622_v30, %v2151_v19  ;;  %v643_v35 = vrot.slane %v638_v25, 4 }
 0x284   : > { %v620_v33 = vsel %vm490_vm1, %v619_v29, %v2248_v40 }
 0x285   : > { %v655_v36 = vrot.slane %v642_v31, 4  ;;  %v626_v37 = vperm.slane %v620_v33, %v2151_v19  ;;  %v657_v38 = vrot.slane %v630_v32, 4 }
 0x287   : > { %v644_v39 = vsel %vm490_vm1, %v643_v35, %v626_v37  ;;  %v645_v41 = vrot.slane %v626_v37, 4  ;;  %v656_v42 = vsel %vm490_vm1, %v655_v36, %v630_v32  ;;  %v658_v43 = vsel %vm490_vm1, %v642_v31, %v657_v38 }
 0x288   : > { %v650_v44 = vperm.slane %v644_v39, %v2160_v34  ;;  %v662_v45 = vperm.slane %v656_v42, %v2160_v34  ;;  %v666_v46 = vperm.slane %v658_v43, %v2160_v34 }
 0x289   : > { %v646_v40 = vsel %vm490_vm1, %v638_v25, %v645_v41 }
 0x28a   : > { %v654_v47 = vperm.slane %v646_v40, %v2160_v34  ;;  %v671_v48 = vrot.slane %v662_v45, 4  ;;  %v673_v49 = vrot.slane %v666_v46, 4  ;;  %v667_v50 = vrot.slane %v650_v44, 4 }
 0x28c   : > { %v669_v51 = vrot.slane %v654_v47, 4  ;;  %v674_v52 = vsel %vm490_vm1, 0.0, %v673_v49  ;;  %v686_v53 = vsel %vm490_vm1, %v673_v49, %v662_v45  ;;  %v672_v56 = vsel %vm490_vm1, 0.0, %v671_v48 }
 0x28d   : > { %v691_v54 = vrot.slane %v674_v52, 4  ;;  %v690_v58 = vperm.slane %v686_v53, %v2151_v19  ;;  %v668_v62 = vsel %vm490_vm1, 0.0, %v667_v50  ;;  %v1044_v45 = vadd.f32 1.25e-07, %v2262_v7 }
 0x28e   : > { %v670_v55 = vsel %vm490_vm1, 0.0, %v669_v51  ;;  %v675_v57 = vsel %vm490_vm1, %v669_v51, %v650_v44  ;;  %v1045_v50 = vadd.f32 1.25e-07, %v2266_v11  ;;  %v1042_v53 = vadd.f32 1.25e-07, %v2270_v14 }
 0x28f   : > { %v679_v59 = vperm.slane %v675_v57, %v2151_v19  ;;  %v680_v60 = vrot.slane %v670_v55, 4  ;;  %v692_v61 = vsel %vm490_vm1, %v691_v54, %v672_v56  ;;  %v711_v0 = vrot.slane %v690_v58, 4 }
 0x290   : > { %v696_v63 = vperm.slane %v692_v61, %v2151_v19 }
 0x291   : > { %v681_v1 = vsel %vm490_vm1, %v680_v60, %v668_v62  ;;  %v699_v2 = vrot.slane %v679_v59, 4 }
 0x292   : > { %v685_v3 = vperm.slane %v681_v1, %v2151_v19  ;;  %v709_v4 = vrot.slane %v696_v63, 4  ;;  %v712_v5 = vsel %vm490_vm1, %v696_v63, %v711_v0 }
 0x293   : > { %v720_v6 = vperm.slane %v712_v5, %v2160_v34 }
 0x294   : > { %v697_v8 = vrot.slane %v685_v3, 4  ;;  %v700_v9 = vsel %vm490_vm1, %v685_v3, %v699_v2  ;;  %v710_v10 = vsel %vm490_vm1, %v709_v4, %v690_v58 }
 0x295   : > { %v708_v12 = vperm.slane %v700_v9, %v2160_v34  ;;  %v716_v13 = vperm.slane %v710_v10, %v2160_v34  ;;  %v725_v15 = vrot.slane %v720_v6, 4 }
 0x296   : > { %v698_v16 = vsel %vm490_vm1, %v697_v8, %v679_v59  ;;  %v1043_v59 = vadd.f32 1.25e-07, %v2274_v20 }
 0x297   : > { %v704_v17 = vperm.slane %v698_v16, %v2160_v34  ;;  %v721_v18 = vrot.slane %v716_v13, 4  ;;  %v726_v21 = vsel %vm490_vm1, %v725_v15, %v708_v12  ;;  %v727_v22 = vrot.slane %v708_v12, 4 }
 0x298   : > { %v731_v23 = vpack.c.bf16 %v726_v21, %v726_v21 }
 0x299   : > { %v722_v24 = vsel %vm490_vm1, %v721_v18, %v704_v17  ;;  %v723_v25 = vrot.slane %v704_v17, 4  ;;  %v728_v26 = vsel %vm490_vm1, %v720_v6, %v727_v22 }
 0x29a   : > { %v729_v27 = vpack.c.bf16 %v722_v24, %v722_v24  ;;  %v732_v28 = vpack.c.bf16 %v728_v26, %v728_v26  ;;  %735 = vst.msk [vmem:[#allocation3 + $0x8] sm:$0xf] %vm604_vm2, %v731_v23 }
 0x29b   : > { %v724_v29 = vsel %vm490_vm1, %v716_v13, %v723_v25 }
 0x29c   : > { %v730_v30 = vpack.c.bf16 %v724_v29, %v724_v29  ;;  %733 = vst.msk [vmem:[#allocation3] sm:$0xf] %vm604_vm2, %v729_v27 }
 0x29d   : > { %736 = vst.msk [vmem:[#allocation3 + $0xc] sm:$0xf] %vm604_vm2, %v732_v28 }
 0x29e   : > { %734 = vst.msk [vmem:[#allocation3 + $0x4] sm:$0xf] %vm604_vm2, %v730_v30 }
 0x2a1   : > { %v907_v31 = vld [vmem:[#allocation3 + $0x8] sm:$0xf] }
 0x2a2   : > { %v1101_v32 = vsel %vm1061_vm5, %v907_v31, 0 }
 0x2a3   : > { %1110 = vmatpush.bf16.msra.mxu1 %v1101_v32  ;;  %v905_v33 = vld [vmem:[#allocation3] sm:$0xf] }
 0x2a4   : > { %v1063_v35 = vsel %vm1061_vm5, %v905_v33, 0  ;;  %v908_v36 = vld [vmem:[#allocation3 + $0xc] sm:$0xf] }
 0x2a5   : > { %1072 = vmatpush.bf16.msrb.mxu3 %v1063_v35  ;;  %v1120_v37 = vsel %vm1061_vm5, %v908_v36, 0  ;;  %v906_v38 = vld [vmem:[#allocation3 + $0x4] sm:$0xf] }
 0x2a6   : > { %1129 = vmatpush.bf16.msra.mxu2 %v1120_v37  ;;  %v1082_v39 = vsel %vm1061_vm5, %v906_v38, 0 }
 0x2a7   : > { %1091 = vmatpush.bf16.msra.mxu0 %v1082_v39 }
 0x2e6   : > { %v1034_v41 = vpop.xlane.xlu2 %1033 }
 0x2e7   : > { %v1040_v42 = vadd.f32 1e-06, %v1034_v41 }
 0x2e9   : > { %1656 = vrcp.f32 %v1040_v42 }
 0x2eb   : > { %v1037_v43 = vpop.xlane.xlu1 %1036 }
 0x2ec   : > { %v1041_v44 = vadd.f32 1e-06, %v1037_v43 }
 0x2ee   : > { %1658 = vrcp.f32 %v1041_v44  ;;  %v1028_v46 = vpop.xlane.xlu0 %1027 }
 0x2ef   : > { %v1657_v40 = vpop.eup %1656  ;;  %v1038_v47 = vadd.f32 1e-06, %v1028_v46 }
 0x2f0   : > { %v1052_v48 = vmul.f32 %v1657_v40, %v1044_v45 }
 0x2f1   : > { %1660 = vrcp.f32 %v1038_v47 }
 0x2f2   : > { %v1056_v49 = vpack.c.bf16 %v1052_v48, %v1052_v48 }
 0x2f4   : > { %v1659_v51 = vpop.eup %1658  ;;  %1505 = vmatmul.msk.bf16.vlgmr.msra.gmra.mxu1 %vm909_vm3, %v1056_v49 }
 0x2f5   : > { %v1053_v52 = vmul.f32 %v1659_v51, %v1045_v50 }
 0x2f6   : > { %v1031_v54 = vpop.xlane.xlu0 %1030 }
 0x2f7   : > { %v1661_v55 = vpop.eup %1660  ;;  %v1057_v56 = vpack.c.bf16 %v1053_v52, %v1053_v52  ;;  %v1039_v57 = vadd.f32 1e-06, %v1031_v54 }
 0x2f8   : > { %v1050_v7 = vmul.f32 %v1661_v55, %v1042_v53 }
 0x2f9   : > { %1662 = vrcp.f32 %v1039_v57  ;;  %1506 = vmatmul.msk.bf16.vlgmr.msra.gmra.mxu2 %vm909_vm3, %v1057_v56 }
 0x2fa   : > { %v1054_v58 = vpack.c.bf16 %v1050_v7, %v1050_v7 }
 0x2fc   : > { %1503 = vmatmul.msk.bf16.vlgmr.msrb.gmra.mxu3 %vm909_vm3, %v1054_v58 }
 0x2ff   : > { %v1663_v11 = vpop.eup %1662 }
 0x300   : > { %v1051_v60 = vmul.f32 %v1663_v11, %v1043_v59 }
 0x302   : > { %v1055_v61 = vpack.c.bf16 %v1051_v60, %v1051_v60 }
 0x304   : > { %1504 = vmatmul.msk.bf16.vlgmr.msra.gmra.mxu0 %vm909_vm3, %v1055_v61 }
 0x371   : > { %v1112_v62 = vpop.f32.mrf.mxu1 }
 0x372   : > { %v1135_v0 = vrot.slane %v1112_v62, 4 }
 0x379   : > { %v1114_v14 = vpop.f32.mrf.mxu1 }
 0x37c   : > { %v1131_v63 = vpop.f32.mrf.mxu2 }
 0x37d   : > { %v1147_v1 = vrot.slane %v1131_v63, 4 }
 0x37f   : > { %v1074_v2 = vpop.f32.mrf.mxu3 }
 0x380   : > { %v1136_v3 = vsel %vm490_vm1, %v1135_v0, %v1074_v2  ;;  %v1137_v4 = vrot.slane %v1074_v2, 4 }
 0x381   : > { %v1142_v5 = vperm.slane %v1136_v3, %v2151_v19  ;;  %v1093_v6 = vpop.f32.mrf.mxu0 }
 0x382   : > { %v1138_v8 = vsel %vm490_vm1, %v1112_v62, %v1137_v4  ;;  %v1148_v20 = vsel %vm490_vm1, %v1147_v1, %v1093_v6  ;;  %v1149_v9 = vrot.slane %v1093_v6, 4  ;;  %v1527_v4 = vld [vmem:[#allocation13 + $0x8] sm:$0xff] }
 0x383   : > { %v1146_v10 = vperm.slane %v1138_v8, %v2151_v19  ;;  %v1161_v12 = vrot.slane %v1142_v5, 4  ;;  %v1154_v13 = vperm.slane %v1148_v20, %v2151_v19  ;;  %1292 = vmatpush.bf16.msra.mxu3 %v1527_v4 }
 0x384   : > { %v1150_v15 = vsel %vm490_vm1, %v1131_v63, %v1149_v9  ;;  %v1133_v16 = vpop.f32.mrf.mxu2 }
 0x385   : > { %v1173_v17 = vrot.slane %v1146_v10, 4  ;;  %v1158_v18 = vperm.slane %v1150_v15, %v2151_v19  ;;  %v1159_v21 = vrot.slane %v1154_v13, 4  ;;  %v1162_v22 = vsel %vm490_vm1, %v1154_v13, %v1161_v12  ;;  %v1647_v13 = vld [vmem:[%s2423_s6] ss:$0 sm:$0xff] }
 0x386   : > { %v1170_v23 = vperm.slane %v1162_v22, %v2160_v34 }
 0x387   : > { %v1160_v24 = vsel %vm490_vm1, %v1159_v21, %v1142_v5  ;;  %v1171_v25 = vrot.slane %v1158_v18, 4  ;;  %v1174_v26 = vsel %vm490_vm1, %v1158_v18, %v1173_v17  ;;  %v1076_v27 = vpop.f32.mrf.mxu3  ;;  %v1526_v5 = vld [vmem:[#allocation13] sm:$0xff] }
 0x388   : > { %v1166_v28 = vperm.slane %v1160_v24, %v2160_v34  ;;  %v1182_v29 = vperm.slane %v1174_v26, %v2160_v34  ;;  %v1185_v30 = vrot.slane %v1170_v23, 4  ;;  %1293 = vmatpush.bf16.msra.mxu3 %v1526_v5 }
 0x389   : > { %v1172_v31 = vsel %vm490_vm1, %v1171_v25, %v1146_v10  ;;  %v1095_v32 = vpop.f32.mrf.mxu0 }
 0x38a   : > { %v1178_v33 = vperm.slane %v1172_v31, %v2160_v34  ;;  %v1183_v35 = vrot.slane %v1166_v28, 4  ;;  %v1186_v36 = vsel %vm490_vm1, 0.0, %v1185_v30  ;;  %v1189_v37 = vrot.slane %v1182_v29, 4 }
 0x38b   : > { %v1191_v38 = vsel %vm490_vm1, %v1185_v30, %v1166_v28  ;;  %v1196_v39 = vrot.slane %v1186_v36, 4 }
 0x38c   : > { %v1184_v41 = vsel %vm490_vm1, 0.0, %v1183_v35  ;;  %v1187_v42 = vrot.slane %v1178_v33, 4  ;;  %v1190_v43 = vsel %vm490_vm1, 0.0, %v1189_v37  ;;  %v1195_v44 = vperm.slane %v1191_v38, %v2151_v19 }
 0x38d   : > { %v1207_v45 = vrot.slane %v1190_v43, 4  ;;  %v1197_v46 = vsel %vm490_vm1, %v1196_v39, %v1184_v41  ;;  %v1202_v40 = vsel %vm490_vm1, %v1189_v37, %v1178_v33 }
 0x38e   : > { %v1188_v47 = vsel %vm490_vm1, 0.0, %v1187_v42  ;;  %v1201_v48 = vperm.slane %v1197_v46, %v2151_v19  ;;  %v1206_v49 = vperm.slane %v1202_v40, %v2151_v19  ;;  %v1215_v50 = vrot.slane %v1195_v44, 4 }
 0x38f   : > { %v1208_v51 = vsel %vm490_vm1, %v1207_v45, %v1188_v47 }
 0x390   : > { %v1212_v52 = vperm.slane %v1208_v51, %v2151_v19  ;;  %v1216_v53 = vsel %vm490_vm1, %v1201_v48, %v1215_v50  ;;  %v1227_v54 = vrot.slane %v1206_v49, 4  ;;  %v1213_v55 = vrot.slane %v1201_v48, 4 }
 0x391   : > { %v1224_v56 = vperm.slane %v1216_v53, %v2160_v34 }
 0x392   : > { %v1228_v57 = vsel %vm490_vm1, %v1212_v52, %v1227_v54  ;;  %v1214_v7 = vsel %vm490_vm1, %v1213_v55, %v1195_v44  ;;  %v1225_v58 = vrot.slane %v1212_v52, 4 }
 0x393   : > { %v1236_v59 = vperm.slane %v1228_v57, %v2160_v34  ;;  %v1243_v11 = vrot.slane %v1224_v56, 4  ;;  %v1220_v60 = vperm.slane %v1214_v7, %v2160_v34 }
 0x394   : > { %v1226_v61 = vsel %vm490_vm1, %v1225_v58, %v1206_v49 }
 0x395   : > { %v1244_v19 = vsel %vm490_vm1, %v1236_v59, %v1243_v11  ;;  %v1241_v62 = vrot.slane %v1236_v59, 4  ;;  %v1232_v14 = vperm.slane %v1226_v61, %v2160_v34  ;;  %v1239_v63 = vrot.slane %v1220_v60, 4 }
 0x396   : > { %1254 = vrot.lane.b32.xlu2 %v1244_v19, %s1955_s18 }
 0x397   : > { %v1242_v0 = vsel %vm490_vm1, %v1241_v62, %v1224_v56  ;;  %v1237_v1 = vrot.slane %v1232_v14, 4  ;;  %v1240_v2 = vsel %vm490_vm1, %v1232_v14, %v1239_v63 }
 0x398   : > { %1250 = vrot.lane.b32.xlu0 %v1242_v0, %s1956_s8  ;;  %1246 = vrot.lane.b32.xlu1 %v1240_v2, %s1957_s9 }
 0x399   : > { %v1238_v3 = vsel %vm490_vm1, %v1237_v1, %v1220_v60 }
 0x3f0   : > { %v1255_v20 = vpop.permute.xlu2 %1254 }
 0x40a   : > { %v1251_v34 = vpop.permute.xlu0 %1250  ;;  %v1247_v6 = vpop.permute.xlu1 %1246 }
 0x40b   : > { %v1257_v8 = vsel %vm909_vm3, %v1238_v3, %v1247_v6 }
 0x40c   : > { %v1259_v9 = vsel %vm1258_vm6, %v1257_v8, %v1251_v34 }
 0x40d   : > { %v1261_v10 = vsel %vm1260_vm7, %v1259_v9, %v1255_v20 }
 0x40e   : > { %v1262_v12 = vpack.c.bf16 %v1261_v10, %v1261_v10 }
 0x410   : > { %1515 = vmatmul.msk.bf16.vlgmr.msra.gmra.mxu3 %vm433_vm0, %v1262_v12 }
 0x493   : > { %v1295_v15 = vpop.f32.mrf.mxu3 }
 0x494   : > { %v1296_v16 = vadd.f32 %v1647_v13, %v1295_v15 }
 0x496   : > { %1299 = vst.msk [vmem:[%s410_s10] sm:$0xff] %vm433_vm0, %v1296_v16 }
 0x497   : > { %1871 = shalt.err (!%p1868_p13)
}
 0x498   : > { %1548 = dma.vmem_to_hbm [thread:$0]  (%p2090_p2), %s1315_s4, 128, %s1317_s23, %s1301_s27  }
 0x49b   : > { %v1297_v17 = vpop.f32.mrf.mxu3 }
 0x49c PF: > { %s1328_s18 = sand.u32 1, %s1922_s24   ;;  %p1571_p0 = pnand %p1462_p6, %p2097_p5 }
 0x49d   : > { %s1329_s8 = scalar_lea.sflag [#allocation6], %s1328_s18 }
 0x49e   : > { %p1572_p4 = pneg %p1571_p0 }
 0x4a0   : > { %1917 = dma.done.wait (%p1572_p4), %s1329_s8, 128  }
 0x4a1   : > { %1919 = vsyncadd (%p1572_p4), %s1329_s8, 4294967168  ;;  %s28_s29 = sadd.s32 1, %s1942_s29   ;;  %s2447_s9 = sld [smem:[#allocation22_spill]] }
 0x4a2   : > { %p25_p7 = scmp.ge.s32.totalorder %s28_s29, 4   ;;  %s2448_s26 = sld [smem:[#allocation24_spill]] }
 0x4a3   : > { %s2449_s19 = sld [smem:[#allocation23_spill]]  ;;  %s2450_s24 = smov %s1926_s25 }
 0x4a4   : > { %s2452_s27 = smov %s1938_s28 }
 0x4a5   :  { %27 = sbr.rel (!%p25_p7) target bundleno = 15 (0xf), region = 127 }
 0x4a7   : > { %s2451_s25 = smov %s2447_s9 }
 0x4a9   : > { %s2453_s28 = smov %s2449_s19 }
 0x4aa   :  { %1335 = vsyncpa [#allocation5], 1 }
 0x4ab   :  { %1337 = vsyncpa [#allocation5 + $0x1], 1 }
 0x4ac   :  { %1338 = vsyncpa [#allocation8], 1 }
 0x4ad   :  { %1340 = vsyncpa [#allocation8 + $0x1], 1 }
 0x4ae   :  { %1341 = vsyncpa [#allocation11], 1 }
 0x4af   :  { %1342 = vsyncpa [#allocation14], 1 }
 0x4b0   :  { %1343 = vsyncpa [#allocation6], 1 }
 0x4b1   :  { %1345 = vsyncpa [#allocation6 + $0x1], 1 }

</bundles_post_ra>
